<compile_context>
chip_gen: v7x
topology: tpu7x:2x2x1
jax: 0.10.0
libtpu: 0.0.40
codegen_flags: <defaults>
</compile_context>

<pallas_src>
import functools

import numpy as np
import jax
import jax.numpy as jnp
from jax.experimental import pallas as pl
from jax.experimental.pallas import tpu as pltpu


def _harmonic_kernel(freq_ref, x_ref, out_ref, *, dim, n_harm, n_pad,
                     append_input):
    """One row tile of the harmonic embedding.

    freq_ref : (n_pad, 1)                 frequencies (* omega_0), zero-padded
    x_ref    : (TM, D)                    input rows
    out_ref  : (TM, (2*N + append) * D)   output rows
    """
    x = x_ref[...]                        # (TM, D)   f32
    f8 = freq_ref[...]                    # (n_pad, 1) f32, rows >= n_harm are 0

    # Rows onto lanes so the transcendentals run lane-dense (XLU transpose).
    x_t = jnp.transpose(x)                # (D, TM)

    # Per-channel phase blocks, each padded to n_pad (multiple of 8) sublanes
    # so every sublane concat below stays tile-aligned.
    #   phases[i][n, :] = f_n * x[:, i]
    phases = [f8 * x_t[i:i + 1, :] for i in range(dim)]        # D x (n_pad, TM)

    # One lane-dense sin pass and one cos pass; aligned sublane concat into a
    # single slab so only ONE transpose back is needed.
    trig = [jnp.sin(p) for p in phases] + [jnp.cos(p) for p in phases]
    sc = jnp.concatenate(trig, axis=0)    # (2*D*n_pad, TM), offsets 8-aligned
    sc_t = jnp.transpose(sc)              # (TM, 2*D*n_pad)

    # Assemble the PyTorch column order with cheap lane slices, then a single
    # full-width (lane-dense) store of the output block.
    cols = []
    for half in range(2):                 # 0 = sin block, 1 = cos block
        for i in range(dim):
            base = (half * dim + i) * n_pad
            cols.append(sc_t[:, base:base + n_harm])
    if append_input:
        cols.append(x)
    out_ref[...] = jnp.concatenate(cols, axis=-1)


def harmonic_embedding(x, *, n_harmonic_functions=6, omega_0=1.0,
                       logspace=True, append_input=True, row_tile=4096):
    """Pallas implementation of HarmonicEmbedding.forward (float32)."""
    n = n_harmonic_functions
    if logspace:
        freqs = 2.0 ** np.arange(n, dtype=np.float32)    # exact powers of two
    else:
        freqs = np.linspace(1.0, 2.0 ** (n - 1), n, dtype=np.float32)
    freqs = freqs * np.float32(omega_0)

    # Frequency column, zero-padded to a sublane-aligned height.
    n_pad = ((n + 7) // 8) * 8
    f8 = np.zeros((n_pad, 1), dtype=np.float32)
    f8[:n, 0] = freqs
    f8 = jnp.asarray(f8)

    orig_shape = x.shape
    dim = int(orig_shape[-1])
    m = int(np.prod(orig_shape[:-1], dtype=np.int64)) if len(orig_shape) > 1 else 1
    x2 = x.reshape(m, dim).astype(jnp.float32)

    # Row tile: multiple of 8, as large as requested but no larger than the
    # (8-padded) row count.  Ragged last tile handled by zero-padding.
    m_pad8 = max(8, ((m + 7) // 8) * 8)
    tile = max(8, (min(int(row_tile), m_pad8) // 8) * 8)
    m_pad = ((m + tile - 1) // tile) * tile
    if m_pad != m:
        x2 = jnp.pad(x2, ((0, m_pad - m), (0, 0)))

    out_dim = dim * (2 * n + int(append_input))
    kernel = functools.partial(_harmonic_kernel, dim=dim, n_harm=n,
                               n_pad=n_pad, append_input=append_input)

    out2 = pl.pallas_call(
        kernel,
        out_shape=jax.ShapeDtypeStruct((m_pad, out_dim), jnp.float32),
        grid=(m_pad // tile,),
        in_specs=[
            # Constant block index -> fetched once, never re-DMA'd per step.
            pl.BlockSpec((n_pad, 1), lambda i: (0, 0)),
            # Row tile of the input, full feature dim.
            pl.BlockSpec((tile, dim), lambda i: (i, 0)),
        ],
        out_specs=pl.BlockSpec((tile, out_dim), lambda i: (i, 0)),
        compiler_params=pltpu.CompilerParams(
            dimension_semantics=("parallel",),       # megacore split on v7x
            vmem_limit_bytes=40 * 1024 * 1024),      # v5e default (16 MiB) too small
    )(f8, x2)

    if m_pad != m:
        out2 = out2[:m]
    return out2.reshape(*orig_shape[:-1], out_dim)


def _reference(x, *, n_harmonic_functions=6, omega_0=1.0, logspace=True,
               append_input=True):
    """Pure-JAX reference mirroring the PyTorch forward."""
    if logspace:
        freqs = 2.0 ** jnp.arange(n_harmonic_functions, dtype=jnp.float32)
    else:
        freqs = jnp.linspace(1.0, 2.0 ** (n_harmonic_functions - 1),
                             n_harmonic_functions, dtype=jnp.float32)
    freqs = freqs * omega_0
    embed = (x[..., None] * freqs).reshape(*x.shape[:-1], -1)
    parts = [jnp.sin(embed), jnp.cos(embed)]
    if append_input:
        parts.append(x)
    return jnp.concatenate(parts, axis=-1)


if __name__ == "__main__":
    key = jax.random.PRNGKey(0)
    # xyz-style positional input: [batch=2, points=16, dim=3] -> M = 32 rows
    x = jax.random.normal(key, (2, 16, 3), dtype=jnp.float32)

    out = harmonic_embedding(x, n_harmonic_functions=6, omega_0=1.0,
                             logspace=True, append_input=True)
    out = jax.block_until_ready(out)

    ref = _reference(x)
    assert out.shape == (2, 16, 3 * (2 * 6 + 1)), out.shape
    assert jnp.allclose(out, ref, atol=1e-5, rtol=1e-5)

    # Ragged-row / multi-step-grid path (M = 615, tile = 512).
    x_big = jax.random.normal(jax.random.PRNGKey(1), (5, 123, 3),
                              dtype=jnp.float32)
    out_big = jax.block_until_ready(harmonic_embedding(x_big, row_tile=512))
    assert out_big.shape == (5, 123, 39), out_big.shape
    assert jnp.allclose(out_big, _reference(x_big), atol=1e-5, rtol=1e-5)

    # append_input=False path.
    out_na = jax.block_until_ready(harmonic_embedding(x, append_input=False))
    assert out_na.shape == (2, 16, 36), out_na.shape
    assert jnp.allclose(out_na, _reference(x, append_input=False),
                        atol=1e-5, rtol=1e-5)

    print("KERNEL_OK")
</pallas_src>

<mosaic_0001>
module attributes {stable_mosaic.version = 11 : i64} {
  func.func @_harmonic_kernel(%arg0: i32, %arg1: memref<8x1xf32, #tpu.memory_space<vmem>>, %arg2: memref<32x3xf32, #tpu.memory_space<vmem>>, %arg3: memref<32x39xf32, #tpu.memory_space<vmem>>) attributes {dimension_semantics = [#tpu.dimension_semantics<parallel>], iteration_bounds = array<i64: 1>, scalar_prefetch = 0 : i64, scratch_operands = 0 : i64, tpu.core_type = #tpu.core_type<tc>, window_params = [{pipeline_mode = #tpu.pipeline_mode<synchronous>, transform_indices = @transform_0, window_bounds = array<i64: 8, 1>}, {transform_indices = @transform_1, window_bounds = array<i64: 32, 3>}, {transform_indices = @transform_2, window_bounds = array<i64: 32, 39>}]} {
    %c0 = arith.constant 0 : index
    %c0_0 = arith.constant 0 : index
    %0 = vector.load %arg2[%c0, %c0_0] : memref<32x3xf32, #tpu.memory_space<vmem>>, vector<32x3xf32>
    %c0_1 = arith.constant 0 : index
    %c0_2 = arith.constant 0 : index
    %1 = vector.load %arg1[%c0_1, %c0_2] : memref<8x1xf32, #tpu.memory_space<vmem>>, vector<8x1xf32>
    %2 = tpu.transpose %0, [1, 0] : vector<32x3xf32> -> vector<3x32xf32>
    %3 = vector.extract_strided_slice %2 {offsets = [0, 0], sizes = [1, 32], strides = [1, 1]} : vector<3x32xf32> to vector<1x32xf32>
    %4 = vector.broadcast %1 : vector<8x1xf32> to vector<8x32xf32>
    %5 = vector.broadcast %3 : vector<1x32xf32> to vector<8x32xf32>
    %6 = arith.mulf %4, %5 : vector<8x32xf32>
    %7 = vector.extract_strided_slice %2 {offsets = [1, 0], sizes = [1, 32], strides = [1, 1]} : vector<3x32xf32> to vector<1x32xf32>
    %8 = vector.broadcast %1 : vector<8x1xf32> to vector<8x32xf32>
    %9 = vector.broadcast %7 : vector<1x32xf32> to vector<8x32xf32>
    %10 = arith.mulf %8, %9 : vector<8x32xf32>
    %11 = vector.extract_strided_slice %2 {offsets = [2, 0], sizes = [1, 32], strides = [1, 1]} : vector<3x32xf32> to vector<1x32xf32>
    %12 = vector.broadcast %1 : vector<8x1xf32> to vector<8x32xf32>
    %13 = vector.broadcast %11 : vector<1x32xf32> to vector<8x32xf32>
    %14 = arith.mulf %12, %13 : vector<8x32xf32>
    %15 = math.sin %6 : vector<8x32xf32>
    %16 = math.sin %10 : vector<8x32xf32>
    %17 = math.sin %14 : vector<8x32xf32>
    %18 = math.cos %6 : vector<8x32xf32>
    %19 = math.cos %10 : vector<8x32xf32>
    %20 = math.cos %14 : vector<8x32xf32>
    %21 = tpu.concatenate %15, %16, %17, %18, %19, %20 in 0 : vector<8x32xf32>, vector<8x32xf32>, vector<8x32xf32>, vector<8x32xf32>, vector<8x32xf32>, vector<8x32xf32> -> vector<48x32xf32>
    %22 = tpu.transpose %21, [1, 0] : vector<48x32xf32> -> vector<32x48xf32>
    %23 = vector.extract_strided_slice %22 {offsets = [0, 0], sizes = [32, 6], strides = [1, 1]} : vector<32x48xf32> to vector<32x6xf32>
    %24 = vector.extract_strided_slice %22 {offsets = [0, 8], sizes = [32, 6], strides = [1, 1]} : vector<32x48xf32> to vector<32x6xf32>
    %25 = vector.extract_strided_slice %22 {offsets = [0, 16], sizes = [32, 6], strides = [1, 1]} : vector<32x48xf32> to vector<32x6xf32>
    %26 = vector.extract_strided_slice %22 {offsets = [0, 24], sizes = [32, 6], strides = [1, 1]} : vector<32x48xf32> to vector<32x6xf32>
    %27 = vector.extract_strided_slice %22 {offsets = [0, 32], sizes = [32, 6], strides = [1, 1]} : vector<32x48xf32> to vector<32x6xf32>
    %28 = vector.extract_strided_slice %22 {offsets = [0, 40], sizes = [32, 6], strides = [1, 1]} : vector<32x48xf32> to vector<32x6xf32>
    %29 = tpu.concatenate %23, %24, %25, %26, %27, %28, %0 in 1 : vector<32x6xf32>, vector<32x6xf32>, vector<32x6xf32>, vector<32x6xf32>, vector<32x6xf32>, vector<32x6xf32>, vector<32x3xf32> -> vector<32x39xf32>
    %c0_3 = arith.constant 0 : index
    %c0_4 = arith.constant 0 : index
    %30 = vector.load %arg3[%c0_3, %c0_4] : memref<32x39xf32, #tpu.memory_space<vmem>>, vector<32x39xf32>
    tpu.vector_store %arg3[%c0_3, %c0_4], %29 {strides = array<i32>} : memref<32x39xf32, #tpu.memory_space<vmem>>, vector<32x39xf32>,
    return
  }
  func.func @transform_0(%arg0: i32) -> (i32, i32) {
    %c0_i32 = arith.constant 0 : i32
    %c0_i32_0 = arith.constant 0 : i32
    %c0_i32_1 = arith.constant 0 : i32
    return %c0_i32, %c0_i32_0 : i32, i32
  }
  func.func @transform_1(%arg0: i32) -> (i32, i32) {
    %c0_i32 = arith.constant 0 : i32
    %c0_i32_0 = arith.constant 0 : i32
    return %arg0, %c0_i32 : i32, i32
  }
  func.func @transform_2(%arg0: i32) -> (i32, i32) {
    %c0_i32 = arith.constant 0 : i32
    %c0_i32_0 = arith.constant 0 : i32
    return %arg0, %c0_i32 : i32, i32
  }
}

</mosaic_0001>

<bundles_post_ra>
// kernel: tpu_custom_call.1
= control target key start
LH: loop header
LB: loop body
LE: loop exit
PB: predicated region body
PF: predicated region fallthrough
CT: control target
= control target key end

     0   :  { %v943_v1 = vmov 0   ;;  %s1291_s0 = inlined_call_operand.vmem [shape: f32[8,1], index: 0, kind: input, shape index: {}]   ;;  %s1292_s1 = inlined_call_operand.vmem [shape: f32[32,3], index: 1, kind: input, shape index: {}]   ;;  %s1293_s2 = inlined_call_operand.hbm [shape: f32[32,39], index: 2, kind: output, shape index: {}]  }
   0x1   :  { %v16_v0 = vld [vmem:[%s1291_s0] sm:$0xff]  ;;  %906 = vset.pattern.permute.xlu0 %v943_v1 }
   0x2   :  { %7 = vsyncpa [#allocation3], 0  ;;  %51 = vperm.xlu0 %906, %v16_v0   ;;  %v12_v2 = vld [vmem:[%s1292_s1] sm:$0xff]  ;;  %v13_v3 = vld [vmem:[%s1292_s1 + $0x8] sm:$0xff]  ;;  %s944_s18 = smov 36   ;;  %v54_v6 = vlaneseq  ;;  %s952_s19 = smov 124  }
   0x3   :  { %v986_v4 = vld [vmem:[%s1292_s1 + $0x10] sm:$0xff]  ;;  %v992_v5 = vld [vmem:[%s1292_s1 + $0x18] sm:$0xff]  ;;  %790 = vrot.lane.b32.xlu1 %v12_v2, %s944_s18  ;;  %v945_v50 = vmov 683565275   ;;  %v946_v52 = vmov 2475754826  }
   0x4   :  { %v55_v7 = vshrl.u32 %v54_v6, 7  ;;  %v947_v54 = vmov 2131351028   ;;  %v948_v56 = vmov 2102212464   ;;  %s951_s1 = smov 126  }
   0x5   :  { %v949_v61 = vmov 920167782   ;;  %v950_v1 = vmov 1326507024   ;;  %s953_s20 = smov 122   ;;  %s954_s21 = smov 120  }
   0x6   :  { %v56_v9 = vsub.s32 0, %v55_v7  ;;  %v61_v10 = vsub.s32 1, %v55_v7  ;;  %v66_v11 = vsub.s32 2, %v55_v7  ;;  %s955_s22 = smov 118   ;;  %s956_s23 = smov [#allocation2]  }
   0x7   :  { %s842_s24 = sshll.u32 %s956_s23, 4  ;;  %s843_s24 = int_to_ptr.vmem [resolvable:$true] %s842_s24 }
   0x8   :  { %s919_s25 = scalar_lea.vmem %s843_s24, 512  ;;  %p924_p1 = scmp.lt.s32.totalorder %s843_s24, %s843_s24 }
   0x9   :  { %p920_p0 = scmp.ne.s32.totalorder %s843_s24, %s919_s25  ;;  %p925_p2 = scmp.lt.s32.totalorder %s919_s25, %s919_s25 }
   0xb   :  { %p926_p3 = por %p925_p2, %p924_p1 }
   0xd   :  { %p927_p4 = pnand %p926_p3, %p920_p0 }
  0x20   :  { %17 = vxpose.xlu0.b32.start [1/4] (short) (narrow) %v12_v2, 8 }
  0x24   :  { %18 = vxpose.xlu0.b32.cont [2/4] (short) (narrow) %v13_v3, 8 }
  0x28   :  { %19 = vxpose.xlu0.b32.cont [3/4] (short) (narrow) %v986_v4, 8 }
  0x2c   :  { %20 = vxpose.xlu0.b32.end [4/4] (short) (narrow) %v992_v5, 8 }
  0x55   :  { %792 = vrot.lane.b32.xlu0 %v13_v3, %s944_s18 }
  0x81   :  { %v52_v8 = vpop.permute.xlu0 %51 }
  0xa0   :  { %v33_v12 = vpop.trf.xlu0 }
  0xa1   :  { %v57_v13 = vrot.slane %v33_v12, %v56_v9  ;;  %v62_v14 = vrot.slane %v33_v12, %v61_v10  ;;  %v67_v15 = vrot.slane %v33_v12, %v66_v11 }
  0xa3   :  { %v997_v16 = vmul.f32 %v57_v13, %v52_v8  ;;  %v999_v17 = vmul.f32 %v62_v14, %v52_v8  ;;  %v1001_v18 = vmul.f32 %v67_v15, %v52_v8 }
  0xa5   :  { %v72_v19 = vand.u32 2139095040, %v997_v16  ;;  %v176_v20 = vand.u32 2139095040, %v999_v17  ;;  %v280_v21 = vand.u32 2139095040, %v1001_v18  ;;  %v69_v22 = vand.u32 2147483647, %v997_v16 }
  0xa6   :  { %v173_v23 = vand.u32 2147483647, %v999_v17  ;;  %v277_v45 = vand.u32 2147483647, %v1001_v18 }
  0xa7   :  { %v73_v24 = vshrl.u32 %v72_v19, 23  ;;  %v177_v25 = vshrl.u32 %v176_v20, 23  ;;  %v281_v26 = vshrl.u32 %v280_v21, 23  ;;  %v76_v27 = vand.u32 8388607, %v69_v22 }
  0xa8   :  { %v180_v28 = vand.u32 8388607, %v173_v23 }
  0xa9   :  { %v853_v29 = vadd.s32 4294967169, %v73_v24  ;;  %v857_v30 = vadd.s32 4294967169, %v177_v25  ;;  %v861_v31 = vadd.s32 4294967169, %v281_v26  ;;  %v77_v35 = vor.u32 8388608, %v76_v27 }
  0xaa   :  { %v181_v36 = vor.u32 8388608, %v180_v28 }
  0xab   :  { %v79_v32 = vadd.s32 1, %v853_v29  ;;  %v183_v33 = vadd.s32 1, %v857_v30  ;;  %v287_v34 = vadd.s32 1, %v861_v31  ;;  %v1016_v43 = vshll.u32 %v77_v35, 8 }
  0xac   :  { %v1018_v44 = vshll.u32 %v181_v36, 8 }
  0xad   :  { %vm80_vm0 = vcmp.gt.s32.totalorder %v79_v32, 0  ;;  %vm184_vm1 = vcmp.gt.s32.totalorder %v183_v33, 0  ;;  %vm288_vm2 = vcmp.gt.s32.totalorder %v287_v34, 0 }
  0xae   :  { %v81_v37 = vsel %vm80_vm0, %v79_v32, 0  ;;  %v185_v38 = vsel %vm184_vm1, %v183_v33, 0  ;;  %v1012_v39 = vsel %vm288_vm2, %v287_v34, 0 }
  0xaf   :  { %v83_v40 = vand.u32 31, %v81_v37  ;;  %v1014_v41 = vand.u32 31, %v185_v38  ;;  %v82_v42 = vshrl.u32 %v81_v37, 5  ;;  %v1021_v47 = vshrl.u32 %v185_v38, 5 }
  0xb0   :  { %v1025_v49 = vand.u32 31, %v1012_v39 }
  0xb1   :  { %v84_v46 = vsub.s32 32, %v83_v40  ;;  %v188_v48 = vsub.s32 32, %v1014_v41  ;;  %v86_v51 = vshll.u32 %v945_v50, %v83_v40  ;;  %v89_v53 = vshll.u32 %v946_v52, %v83_v40 }
  0xb2   :  { %v92_v55 = vshll.u32 %v947_v54, %v83_v40  ;;  %v95_v57 = vshll.u32 %v948_v56, %v83_v40  ;;  %v98_v62 = vshll.u32 %v949_v61, %v83_v40  ;;  %vm101_vm3 = vcmp.lt.s32.totalorder %v82_v42, 1 }
  0xb3   :  { %v87_v58 = vshrl.u32 %v946_v52, %v84_v46  ;;  %v90_v59 = vshrl.u32 %v947_v54, %v84_v46  ;;  %v93_v60 = vshrl.u32 %v948_v56, %v84_v46  ;;  %v85_v63 = vshrl.u32 %v945_v50, %v84_v46 }
  0xb4   :  { %v96_v0 = vshrl.u32 %v949_v61, %v84_v46  ;;  %v99_v2 = vshrl.u32 %v950_v1, %v84_v46  ;;  %vm102_vm4 = vcmp.lt.s32.totalorder %v82_v42, 2  ;;  %vm103_vm5 = vcmp.lt.s32.totalorder %v82_v42, 3 }
  0xb5   :  { %v88_v3 = vor.u32 %v87_v58, %v86_v51  ;;  %v91_v6 = vor.u32 %v90_v59, %v89_v53  ;;  %v94_v7 = vor.u32 %v93_v60, %v92_v55  ;;  %vm104_vm6 = vcmp.lt.s32.totalorder %v82_v42, 4 }
  0xb6   :  { %v97_v8 = vor.u32 %v96_v0, %v95_v57  ;;  %v100_v9 = vor.u32 %v99_v2, %v98_v62  ;;  %v189_v20 = vshrl.u32 %v945_v50, %v188_v48  ;;  %v190_v25 = vshll.u32 %v945_v50, %v1014_v41 }
  0xb7   :  { %v105_v10 = vsel %vm101_vm3, %v85_v63, %v88_v3  ;;  %v106_v11 = vsel %vm104_vm6, %v94_v7, 2102212464  ;;  %v109_v12 = vsel %vm101_vm3, %v88_v3, %v91_v6  ;;  %v113_v13 = vsel %vm101_vm3, %v91_v6, %v94_v7 }
  0xb8   :  { %v107_v14 = vsel %vm103_vm5, %v91_v6, %v106_v11  ;;  %v110_v15 = vsel %vm104_vm6, %v97_v8, 920167782  ;;  %v114_v19 = vsel %vm104_vm6, %v100_v9, 1326507024  ;;  %v191_v26 = vshrl.u32 %v946_v52, %v188_v48 }
  0xb9   :  { %v111_v21 = vsel %vm103_vm5, %v94_v7, %v110_v15  ;;  %v115_v24 = vsel %vm103_vm5, %v97_v8, %v114_v19  ;;  %v108_v27 = vsel %vm102_vm4, %v105_v10, %v107_v14  ;;  %v193_v30 = vshll.u32 %v946_v52, %v1014_v41 }
  0xba   :  { %v112_v28 = vsel %vm102_vm4, %v109_v12, %v111_v21  ;;  %v116_v29 = vsel %vm102_vm4, %v113_v13, %v115_v24  ;;  %v192_v35 = vor.u32 %v191_v26, %v190_v25  ;;  %v194_v36 = vshrl.u32 %v947_v54, %v188_v48 }
  0xbb   :  { %v1048_v31 = vmul.u32.u64.low %v1016_v43, %v116_v29  ;;  %v1049_v32 = vmul.u32.u64.high %v1016_v43, %v116_v29, %v1048_v31  ;;  %v1052_v33 = vmul.u32.u64.low %v1016_v43, %v112_v28  ;;  %v1053_v34 = vmul.u32.u64.high %v1016_v43, %v112_v28, %v1052_v33 }
  0xbc   :  { %v196_v37 = vshll.u32 %v947_v54, %v1014_v41  ;;  %v197_v38 = vshrl.u32 %v948_v56, %v188_v48  ;;  %v124_v40 = vmul.u32 %v1016_v43, %v108_v27  ;;  %v199_v42 = vshll.u32 %v948_v56, %v1014_v41 }
  0xbd   :  { %v200_v46 = vshrl.u32 %v949_v61, %v188_v48  ;;  %v203_v51 = vshrl.u32 %v950_v1, %v188_v48  ;;  %v195_v53 = vor.u32 %v194_v36, %v193_v30  ;;  %v202_v57 = vshll.u32 %v949_v61, %v1014_v41 }
  0xbe   :  { %v198_v55 = vor.u32 %v197_v38, %v196_v37  ;;  %vm205_vm7 = vcmp.lt.s32.totalorder %v1021_v47, 1  ;;  %vm126_vm8 = vc.u32 %v1049_v32, %v1052_v33  ;;  %v127_v58 = vadd.s32 1, %v1053_v34 }
  0xbf   :  { %v201_v43 = vor.u32 %v200_v46, %v199_v42  ;;  %vm206_vm9 = vcmp.lt.s32.totalorder %v1021_v47, 2  ;;  %v204_v59 = vor.u32 %v203_v51, %v202_v57  ;;  %vm207_vm10 = vcmp.lt.s32.totalorder %v1021_v47, 3 }
  0xc0   :  { %vm208_vm11 = vcmp.lt.s32.totalorder %v1021_v47, 4  ;;  %v209_v48 = vsel %vm205_vm7, %v189_v20, %v192_v35  ;;  %v128_v41 = vsel %vm126_vm8, %v127_v58, %v1053_v34  ;;  %v213_v62 = vsel %vm205_vm7, %v192_v35, %v195_v53 }
  0xc1   :  { %v210_v60 = vsel %vm208_vm11, %v198_v55, 2102212464  ;;  %v214_v63 = vsel %vm208_vm11, %v201_v43, 920167782  ;;  %v129_v0 = vadd.s32 %v128_v41, %v124_v40  ;;  %v217_v6 = vsel %vm205_vm7, %v195_v53, %v198_v55 }
  0xc2   :  { %v211_v2 = vsel %vm207_vm10, %v195_v53, %v210_v60  ;;  %v215_v3 = vsel %vm207_vm10, %v198_v55, %v214_v63  ;;  %v292_v7 = vsub.s32 32, %v1025_v49  ;;  %v218_v10 = vsel %vm208_vm11, %v204_v59, 1326507024 }
  0xc3   :  { %v212_v8 = vsel %vm206_vm9, %v209_v48, %v211_v2  ;;  %v216_v9 = vsel %vm206_vm9, %v213_v62, %v215_v3  ;;  %v130_v11 = vadd.s32 536870912, %v129_v0  ;;  %v219_v12 = vsel %vm207_vm10, %v201_v43, %v218_v10 }
  0xc4   :  { %v1093_v13 = vmul.u32.u64.low %v1018_v44, %v216_v9  ;;  %v1094_v14 = vmul.u32.u64.high %v1018_v44, %v216_v9, %v1093_v13  ;;  %v220_v15 = vsel %vm206_vm9, %v217_v6, %v219_v12  ;;  %v1106_v24 = vshrl.u32 %v1012_v39, 5 }
  0xc5   :  { %v1099_v19 = vshrl.u32 %v130_v11, 30  ;;  %v1102_v20 = vmul.u32.u64.low %v1018_v44, %v220_v15  ;;  %v1103_v21 = vmul.u32.u64.high %v1018_v44, %v220_v15, %v1102_v20  ;;  %v228_v25 = vmul.u32 %v1018_v44, %v212_v8 }
  0xc6   :  { %v284_v26 = vand.u32 8388607, %v277_v45  ;;  %v231_v28 = vadd.s32 1, %v1094_v14  ;;  %v298_v47 = vshrl.u32 %v947_v54, %v292_v7  ;;  %v301_v29 = vshrl.u32 %v948_v56, %v292_v7 }
  0xc7   :  { %v132_v27 = vshll.u32 %v1099_v19, 30  ;;  %v294_v30 = vshll.u32 %v945_v50, %v1025_v49  ;;  %v295_v31 = vshrl.u32 %v946_v52, %v292_v7  ;;  %v303_v39 = vshll.u32 %v948_v56, %v1025_v49 }
  0xc8   :  { %v304_v44 = vshrl.u32 %v949_v61, %v292_v7  ;;  %vm230_vm12 = vc.u32 %v1103_v21, %v1093_v13  ;;  %v297_v35 = vshll.u32 %v946_v52, %v1025_v49  ;;  %v300_v36 = vshll.u32 %v947_v54, %v1025_v49 }
  0xc9   :  { %v133_v34 = vsub.s32 %v129_v0, %v132_v27  ;;  %v232_v37 = vsel %vm230_vm12, %v231_v28, %v1094_v14  ;;  %v306_v40 = vshll.u32 %v949_v61, %v1025_v49  ;;  %v307_v56 = vshrl.u32 %v950_v1, %v292_v7 }
  0xca   :  { %v305_v38 = vor.u32 %v304_v44, %v303_v39  ;;  %v233_v46 = vadd.s32 %v232_v37, %v228_v25  ;;  %v299_v51 = vor.u32 %v298_v47, %v297_v35  ;;  %v302_v53 = vor.u32 %v301_v29, %v300_v36 }
  0xcb   :  { %v135_v42 = vsub.s32 0, %v133_v34  ;;  %v296_v55 = vor.u32 %v295_v31, %v294_v30  ;;  %v308_v57 = vor.u32 %v307_v56, %v306_v40  ;;  %v285_v52 = vor.u32 8388608, %v284_v26 }
  0xcc   :  { %v234_v43 = vadd.s32 536870912, %v233_v46  ;;  %vm312_vm13 = vcmp.lt.s32.totalorder %v1106_v24, 4  ;;  %vm309_vm14 = vcmp.lt.s32.totalorder %v1106_v24, 1  ;;  %vm311_vm15 = vcmp.lt.s32.totalorder %v1106_v24, 3 }
  0xcd   :  { %v854_v58 = vmin.u32 %v135_v42, %v133_v34  ;;  %v318_v54 = vsel %vm312_vm13, %v305_v38, 920167782  ;;  %v321_v49 = vsel %vm309_vm14, %v299_v51, %v302_v53  ;;  %v317_v1 = vsel %vm309_vm14, %v296_v55, %v299_v51 }
  0xce   :  { %v1138_v61 = vshrl.u32 %v234_v43, 30  ;;  %v319_v48 = vsel %vm311_vm15, %v302_v53, %v318_v54  ;;  %v322_v41 = vsel %vm312_vm13, %v308_v57, 1326507024  ;;  %vm310_vm0 = vcmp.lt.s32.totalorder %v1106_v24, 2 }
  0xcf   :  { %v137_v59 = vclz %v854_v58  ;;  %v323_v62 = vsel %vm311_vm15, %v305_v38, %v322_v41  ;;  %v325_v63 = vshll.u32 %v285_v52, 8  ;;  %v293_v2 = vshrl.u32 %v945_v50, %v292_v7 }
  0xd0   :  { %v236_v0 = vshll.u32 %v1138_v61, 30  ;;  %v314_v3 = vsel %vm312_vm13, %v302_v53, 2102212464  ;;  %v324_v6 = vsel %vm310_vm0, %v321_v49, %v323_v62  ;;  %v320_v8 = vsel %vm310_vm0, %v317_v1, %v319_v48 }
  0xd1   :  { %v855_v60 = vadd.s32 4294967294, %v137_v59  ;;  %v1157_v9 = vmul.u32.u64.low %v325_v63, %v324_v6  ;;  %v1158_v10 = vmul.u32.u64.high %v325_v63, %v324_v6, %v1157_v9  ;;  %v125_v14 = vadd.s32 %v1052_v33, %v1049_v32 }
  0xd2   :  { %v237_v12 = vsub.s32 %v233_v46, %v236_v0  ;;  %v313_v7 = vsel %vm309_vm14, %v293_v2, %v296_v55  ;;  %v315_v25 = vsel %vm311_vm15, %v299_v51, %v314_v3  ;;  %v155_v35 = vsub.s32 4, %v1099_v19 }
  0xd3   :  { %vm856_vm1 = vcmp.lt.s32.totalorder %v855_v60, 0  ;;  %v1166_v26 = vmul.u32.u64.low %v325_v63, %v320_v8  ;;  %v1167_v27 = vmul.u32.u64.high %v325_v63, %v320_v8, %v1166_v26  ;;  %v316_v32 = vsel %vm310_vm0, %v313_v7, %v315_v25 }
  0xd4   :  { %v140_v11 = vsel %vm856_vm1, 0, %v855_v60  ;;  %v239_v20 = vsub.s32 0, %v237_v12  ;;  %v332_v38 = vmul.u32 %v325_v63, %v316_v32  ;;  %vm71_vm3 = vcmp.lt.s32.totalorder %v997_v16, 0 }
  0xd5   :  { %v141_v15 = vsub.s32 32, %v140_v11  ;;  %v145_v50 = vsub.s32 4294967266, %v140_v11  ;;  %v142_v28 = vshll.u32 %v133_v34, %v140_v11  ;;  %vm334_vm2 = vc.u32 %v1158_v10, %v1166_v26 }
  0xd6   :  { %v858_v30 = vmin.u32 %v239_v20, %v237_v12  ;;  %v335_v36 = vadd.s32 1, %v1167_v27  ;;  %v156_v46 = vsel %vm71_vm3, %v155_v35, %v1099_v19  ;;  %v229_v53 = vadd.s32 %v1093_v13, %v1103_v21 }
  0xd7   :  { %v143_v47 = vshrl.u32 %v125_v14, %v141_v15  ;;  %v146_v29 = vadd.s32 127, %v145_v50  ;;  %vm70_vm5 = vcmp.le.f32.partialorder %v69_v22, 0.7853982  ;;  %v259_v3 = vsub.s32 4, %v1138_v61 }
  0xd8   :  { %v241_v33 = vclz %v858_v30  ;;  %v336_v56 = vsel %vm334_vm2, %v335_v36, %v1167_v27  ;;  %v1189_v19 = vsel %vm70_vm5, 0, %v156_v46  ;;  %vm175_vm6 = vcmp.lt.s32.totalorder %v999_v17, 0 }
  0xd9   :  { %v144_v31 = vor.u32 %v143_v47, %v142_v28  ;;  %v147_v39 = vshll.u32 %v146_v29, 23  ;;  %v337_v24 = vadd.s32 %v336_v56, %v332_v38  ;;  %v162_v62 = vadd.s32 3, %v1189_v19 }
  0xda   :  { %v859_v37 = vadd.s32 4294967294, %v241_v33  ;;  %v260_v14 = vsel %vm175_vm6, %v259_v3, %v1138_v61  ;;  %vm174_vm7 = vcmp.le.f32.partialorder %v173_v23, 0.7853982  ;;  %v333_v29 = vadd.s32 %v1166_v26, %v1158_v10 }
  0xdb   :  { %v148_v44 = vor.u32 4788187, %v147_v39  ;;  %v151_v40 = vcvt.s32.f32 %v144_v31  ;;  %v338_v58 = vadd.s32 536870912, %v337_v24  ;;  %v163_v9 = vand.u32 3, %v162_v62 }
  0xdc   :  { %vm860_vm4 = vcmp.lt.s32.totalorder %v859_v37, 0  ;;  %v1205_v28 = vsel %vm174_vm7, 0, %v260_v14  ;;  %vm161_vm11 = vweird.f32 %v997_v16  ;;  %vm265_vm0 = vweird.f32 %v999_v17 }
  0xdd   :  { %v149_v34 = vand.u32 2147483647, %v148_v44  ;;  %v244_v51 = vsel %vm860_vm4, 0, %v859_v37  ;;  %v1185_v49 = vshrl.u32 %v338_v58, 30  ;;  %vm165_vm8 = vcmp.eq.s32.totalorder %v163_v9, 0 }
  0xde   :  { %v245_v55 = vsub.s32 32, %v244_v51  ;;  %v249_v57 = vsub.s32 4294967266, %v244_v51  ;;  %v246_v52 = vshll.u32 %v237_v12, %v244_v51  ;;  %vm168_vm10 = vcmp.eq.s32.totalorder %v163_v9, 2 }
  0xdf   :  { %v152_v42 = vmul.f32 %v151_v40, %v149_v34  ;;  %v340_v41 = vshll.u32 %v1185_v49, 30  ;;  %vm164_vm12 = vcmp.lt.s32.totalorder %v163_v9, 2  ;;  %v266_v32 = vadd.s32 3, %v1205_v28 }
  0xe0   :  { %v247_v54 = vshrl.u32 %v229_v53, %v245_v55  ;;  %v250_v59 = vadd.s32 127, %v249_v57  ;;  %v363_v55 = vsub.s32 4, %v1185_v49  ;;  %vm279_vm1 = vcmp.lt.s32.totalorder %v1001_v18, 0 }
  0xe1   :  { %v153_v43 = vxor.u32 2147483648, %v152_v42  ;;  %v341_v60 = vsub.s32 %v337_v24, %v340_v41  ;;  %v267_v38 = vand.u32 3, %v266_v32  ;;  %vm278_vm2 = vcmp.le.f32.partialorder %v277_v45, 0.7853982 }
  0xe2   :  { %v248_v13 = vor.u32 %v247_v54, %v246_v52  ;;  %v251_v21 = vshll.u32 %v250_v59, 23 }
  0xe3   :  { %v154_v1 = vsel %vm71_vm3, %v153_v43, %v152_v42  ;;  %v343_v2 = vsub.s32 0, %v341_v60  ;;  %vm272_vm13 = vcmp.eq.s32.totalorder %v267_v38, 2  ;;  %vm269_vm14 = vcmp.eq.s32.totalorder %v267_v38, 0 }
  0xe4   :  { %v157_v48 = vsel %vm70_vm5, %v997_v16, %v154_v1  ;;  %v252_v22 = vor.u32 4788187, %v251_v21  ;;  %v255_v0 = vcvt.s32.f32 %v248_v13  ;;  %vm268_vm15 = vcmp.lt.s32.totalorder %v267_v38, 2 }
  0xe5   :  { %907 = vcosq.f32 %v157_v48  ;;  %v862_v8 = vmin.u32 %v343_v2, %v341_v60  ;;  %v364_v1 = vsel %vm279_vm1, %v363_v55, %v1185_v49  ;;  %v577_v49 = vand.u32 3, %v1205_v28 }
  0xe6   :  { %909 = vsinq.f32 %v157_v48  ;;  %v253_v63 = vand.u32 2147483647, %v252_v22  ;;  %v366_v13 = vsel %vm278_vm2, 0, %v364_v1  ;;  %v474_v22 = vand.u32 3, %v1189_v19 }
  0xe7   :  { %v345_v12 = vclz %v862_v8  ;;  %v370_v21 = vadd.s32 3, %v366_v13 }
  0xe8   :  { %v256_v6 = vmul.f32 %v255_v0, %v253_v63  ;;  %vm476_vm4 = vcmp.eq.s32.totalorder %v474_v22, 0 }
  0xe9   :  { %v863_v50 = vadd.s32 4294967294, %v345_v12  ;;  %v371_v41 = vand.u32 3, %v370_v21 }
  0xea   :  { %v257_v11 = vxor.u32 2147483648, %v256_v6 }
  0xeb   :  { %vm864_vm9 = vcmp.lt.s32.totalorder %v863_v50, 0  ;;  %vm376_vm3 = vcmp.eq.s32.totalorder %v371_v41, 2  ;;  %vm373_vm5 = vcmp.eq.s32.totalorder %v371_v41, 0 }
  0xec   :  { %v258_v15 = vsel %vm175_vm6, %v257_v11, %v256_v6  ;;  %v348_v23 = vsel %vm864_vm9, 0, %v863_v50  ;;  %vm479_vm6 = vcmp.eq.s32.totalorder %v474_v22, 2  ;;  %vm475_vm9 = vcmp.lt.s32.totalorder %v474_v22, 2 }
  0xed   :  { %v261_v20 = vsel %vm174_vm7, %v999_v17, %v258_v15  ;;  %v349_v30 = vsub.s32 32, %v348_v23  ;;  %v353_v31 = vsub.s32 4294967266, %v348_v23  ;;  %v350_v44 = vshll.u32 %v341_v60, %v348_v23 }
  0xee   :  { %911 = vcosq.f32 %v261_v20  ;;  %vm372_vm7 = vcmp.lt.s32.totalorder %v371_v41, 2  ;;  %v680_v11 = vand.u32 3, %v366_v13 }
  0xef   :  { %v1199_v7 = vpop.eup %907  ;;  %913 = vsinq.f32 %v261_v20  ;;  %v351_v35 = vshrl.u32 %v333_v29, %v349_v30  ;;  %v354_v36 = vadd.s32 127, %v353_v31  ;;  %v793_v31 = vpop.permute.xlu0 %792 }
  0xf0   :  { %v1202_v25 = vpop.eup %909  ;;  %v169_v27 = vxor.u32 2147483648, %v1199_v7 }
  0xf1   :  { %v166_v61 = vxor.u32 2147483648, %v1202_v25  ;;  %v352_v10 = vor.u32 %v351_v35, %v350_v44  ;;  %v355_v26 = vshll.u32 %v354_v36, 23 }
  0xf2   :  { %v170_v47 = vsel %vm168_vm10, %v169_v27, %v1202_v25  ;;  %v481_v19 = vsel %vm479_vm6, %v169_v27, %v1202_v25  ;;  %vm579_vm10 = vcmp.eq.s32.totalorder %v577_v49, 0  ;;  %vm832_vm6 = vcmask 318464  }
  0xf3   :  { %v167_v39 = vsel %vm165_vm8, %v1199_v7, %v166_v61  ;;  %v356_v34 = vor.u32 4788187, %v355_v26  ;;  %v359_v24 = vcvt.s32.f32 %v352_v10  ;;  %v478_v3 = vsel %vm476_vm4, %v1199_v7, %v166_v61  ;;  %v791_v61 = vpop.permute.xlu1 %790 }
  0xf4   :  { %v171_v33 = vsel %vm164_vm12, %v167_v39, %v170_v47  ;;  %vm369_vm8 = vweird.f32 %v1001_v18  ;;  %v482_v9 = vsel %vm475_vm9, %v478_v3, %v481_v19  ;;  %vm582_vm12 = vcmp.eq.s32.totalorder %v577_v49, 2 }
  0xf5   :  { %v172_v37 = vsel %vm161_vm11, nan, %v171_v33  ;;  %v357_v56 = vand.u32 2147483647, %v356_v34  ;;  %v483_v15 = vsel %vm161_vm11, nan, %v482_v9  ;;  %vm802_vm11 = vcmask 48128  }
  0xf6   :  { %690 = vxpose.xlu1.b32.start [1/6] (short) (narrow) %v172_v37, 32  ;;  %vm822_vm4 = vcmask 244736  }
  0xf7   :  { %v360_v53 = vmul.f32 %v359_v24, %v357_v56 }
  0xf8   :  { %v912_v40 = vpop.eup %911 }
  0xf9   :  { %v914_v42 = vpop.eup %913  ;;  %v273_v46 = vxor.u32 2147483648, %v912_v40  ;;  %v361_v43 = vxor.u32 2147483648, %v360_v53 }
  0xfa   :  { %v270_v51 = vxor.u32 2147483648, %v914_v42 }
  0xfb   :  { %v274_v57 = vsel %vm272_vm13, %v273_v46, %v914_v42  ;;  %v362_v59 = vsel %vm279_vm1, %v361_v43, %v360_v53  ;;  %v584_v14 = vsel %vm582_vm12, %v273_v46, %v914_v42  ;;  %vm578_vm13 = vcmp.lt.s32.totalorder %v577_v49, 2 }
  0xfc   :  { %v271_v58 = vsel %vm269_vm14, %v912_v40, %v270_v51  ;;  %v365_v48 = vsel %vm278_vm2, %v1001_v18, %v362_v59  ;;  %v581_v12 = vsel %vm579_vm10, %v912_v40, %v270_v51  ;;  %vm682_vm14 = vcmp.eq.s32.totalorder %v680_v11, 0 }
  0xfd   :  { %v275_v52 = vsel %vm268_vm15, %v271_v58, %v274_v57  ;;  %915 = vcosq.f32 %v365_v48  ;;  %v585_v50 = vsel %vm578_vm13, %v581_v12, %v584_v14  ;;  %vm685_vm15 = vcmp.eq.s32.totalorder %v680_v11, 2 }
  0xfe   :  { %v276_v54 = vsel %vm265_vm0, nan, %v275_v52  ;;  %917 = vsinq.f32 %v365_v48  ;;  %v586_v25 = vsel %vm265_vm0, nan, %v585_v50  ;;  %vm681_vm1 = vcmp.lt.s32.totalorder %v680_v11, 2 }
  0xff   :  { %691 = vxpose.xlu1.b32.cont [2/6] (short) (narrow) %v276_v54, 32  ;;  %vm807_vm0 = vcmask 97280   ;;  %vm812_vm2 = vcmask 146432  }
 0x107   :  { %v916_v60 = vpop.eup %915 }
 0x108   :  { %v918_v62 = vpop.eup %917  ;;  %v377_v63 = vxor.u32 2147483648, %v916_v60 }
 0x109   :  { %v374_v0 = vxor.u32 2147483648, %v918_v62 }
 0x10a   :  { %v378_v45 = vsel %vm376_vm3, %v377_v63, %v918_v62  ;;  %v687_v20 = vsel %vm685_vm15, %v377_v63, %v918_v62  ;;  %vm817_vm3 = vcmask 195584  }
 0x10b   :  { %v375_v2 = vsel %vm373_vm5, %v916_v60, %v374_v0  ;;  %v684_v7 = vsel %vm682_vm14, %v916_v60, %v374_v0  ;;  %vm827_vm5 = vcmask 293888  }
 0x10c   :  { %v379_v6 = vsel %vm372_vm7, %v375_v2, %v378_v45  ;;  %v688_v27 = vsel %vm681_vm1, %v684_v7, %v687_v20 }
 0x10d   :  { %v380_v8 = vsel %vm369_vm8, nan, %v379_v6  ;;  %v689_v28 = vsel %vm369_vm8, nan, %v688_v27 }
 0x10e   :  { %692 = vxpose.xlu1.b32.cont [3/6] (short) (narrow) %v380_v8, 32 }
 0x112   :  { %693 = vxpose.xlu1.b32.cont [4/6] (short) (narrow) %v483_v15, 32 }
 0x116   :  { %694 = vxpose.xlu1.b32.cont [5/6] (short) (narrow) %v586_v25, 32 }
 0x11a   :  { %695 = vxpose.xlu1.b32.end [6/6] (short) (narrow) %v689_v28, 32 }
 0x186   :  { %v706_v16 = vpop.trf.xlu1 }
 0x187   :  { %726 = vrot.lane.b32.xlu1 %v706_v16, %s951_s1 }
 0x18a   :  { %v707_v23 = vpop.trf.xlu1 }
 0x18b   :  { %738 = vrot.lane.b32.xlu1 %v706_v16, %s952_s19  ;;  %728 = vrot.lane.b32.xlu0 %v707_v23, %s951_s1 }
 0x18e   :  { %v708_v17 = vpop.trf.xlu1 }
 0x18f   :  { %750 = vrot.lane.b32.xlu1 %v706_v16, %s953_s20  ;;  %764 = vrot.lane.b32.xlu0 %v707_v23, %s954_s21 }
 0x192   :  { %v709_v47 = vpop.trf.xlu1 }
 0x193   :  { %762 = vrot.lane.b32.xlu1 %v706_v16, %s954_s21  ;;  %776 = vrot.lane.b32.xlu0 %v707_v23, %s955_s22 }
 0x197   :  { %774 = vrot.lane.b32.xlu1 %v706_v16, %s955_s22  ;;  %756 = vrot.lane.b32.xlu0 %v709_v47, %s953_s20 }
 0x19b   :  { %740 = vrot.lane.b32.xlu1 %v707_v23, %s952_s19  ;;  %768 = vrot.lane.b32.xlu0 %v709_v47, %s954_s21 }
 0x19f   :  { %752 = vrot.lane.b32.xlu1 %v707_v23, %s953_s20  ;;  %780 = vrot.lane.b32.xlu0 %v709_v47, %s955_s22 }
 0x1a3   :  { %730 = vrot.lane.b32.xlu1 %v708_v17, %s951_s1  ;;  %796 = vrot.lane.b32.xlu0 %v992_v5, %s944_s18 }
 0x1a7   :  { %742 = vrot.lane.b32.xlu1 %v708_v17, %s952_s19 }
 0x1ab   :  { %754 = vrot.lane.b32.xlu1 %v708_v17, %s953_s20 }
 0x1af   :  { %766 = vrot.lane.b32.xlu1 %v708_v17, %s954_s21 }
 0x1b3   :  { %778 = vrot.lane.b32.xlu1 %v708_v17, %s955_s22 }
 0x1b7   :  { %732 = vrot.lane.b32.xlu1 %v709_v47, %s951_s1 }
 0x1bb   :  { %744 = vrot.lane.b32.xlu1 %v709_v47, %s952_s19 }
 0x1bf   :  { %794 = vrot.lane.b32.xlu1 %v986_v4, %s944_s18 }
 0x1f9   :  { %v727_v18 = vpop.permute.xlu1 %726 }
 0x1fa   :  { %v803_v32 = vsel %vm802_vm11, %v706_v16, %v727_v18 }
 0x1fd   :  { %v739_v29 = vpop.permute.xlu1 %738  ;;  %v729_v44 = vpop.permute.xlu0 %728 }
 0x1fe   :  { %v808_v5 = vsel %vm807_vm0, %v803_v32, %v739_v29  ;;  %v804_v38 = vsel %vm802_vm11, %v707_v23, %v729_v44 }
 0x201   :  { %v751_v30 = vpop.permute.xlu1 %750  ;;  %v765_v10 = vpop.permute.xlu0 %764 }
 0x202   :  { %v813_v33 = vsel %vm812_vm2, %v808_v5, %v751_v30 }
 0x205   :  { %v763_v39 = vpop.permute.xlu1 %762  ;;  %v777_v24 = vpop.permute.xlu0 %776 }
 0x206   :  { %v818_v4 = vsel %vm817_vm3, %v813_v33, %v763_v39 }
 0x209   :  { %v775_v35 = vpop.permute.xlu1 %774  ;;  %v757_v58 = vpop.permute.xlu0 %756 }
 0x20a   :  { %v823_v36 = vsel %vm822_vm4, %v818_v4, %v775_v35 }
 0x20b   :  { %v828_v37 = vsel %vm827_vm5, %v823_v36, %v791_v61 }
 0x20c   :  { %833 = vst.msk [vmem:[#allocation2] sm:$0xff] %vm832_vm6, %v828_v37 }
 0x20d   :  { %v741_v26 = vpop.permute.xlu1 %740  ;;  %v769_v52 = vpop.permute.xlu0 %768 }
 0x20e   :  { %v809_v34 = vsel %vm807_vm0, %v804_v38, %v741_v26 }
 0x211   :  { %v753_v40 = vpop.permute.xlu1 %752  ;;  %v781_v1 = vpop.permute.xlu0 %780 }
 0x212   :  { %v814_v56 = vsel %vm812_vm2, %v809_v34, %v753_v40 }
 0x213   :  { %v819_v42 = vsel %vm817_vm3, %v814_v56, %v765_v10 }
 0x214   :  { %v824_v46 = vsel %vm822_vm4, %v819_v42, %v777_v24 }
 0x215   :  { %v829_v51 = vsel %vm827_vm5, %v824_v46, %v793_v31  ;;  %v731_v53 = vpop.permute.xlu1 %730  ;;  %v797_v63 = vpop.permute.xlu0 %796 }
 0x216   :  { %834 = vst.msk [vmem:[#allocation2 + $0x8] sm:$0xff] %vm832_vm6, %v829_v51  ;;  %v805_v48 = vsel %vm802_vm11, %v708_v17, %v731_v53 }
 0x219   :  { %v743_v55 = vpop.permute.xlu1 %742 }
 0x21a   :  { %v810_v41 = vsel %vm807_vm0, %v805_v48, %v743_v55 }
 0x21d   :  { %v755_v57 = vpop.permute.xlu1 %754 }
 0x21e   :  { %v815_v60 = vsel %vm812_vm2, %v810_v41, %v755_v57 }
 0x221   :  { %v767_v43 = vpop.permute.xlu1 %766 }
 0x222   :  { %v820_v0 = vsel %vm817_vm3, %v815_v60, %v767_v43 }
 0x225   :  { %v779_v54 = vpop.permute.xlu1 %778 }
 0x226   :  { %v825_v49 = vsel %vm822_vm4, %v820_v0, %v779_v54 }
 0x229   :  { %v733_v59 = vpop.permute.xlu1 %732 }
 0x22a   :  { %v806_v13 = vsel %vm802_vm11, %v709_v47, %v733_v59 }
 0x22d   :  { %v745_v21 = vpop.permute.xlu1 %744 }
 0x22e   :  { %v811_v22 = vsel %vm807_vm0, %v806_v13, %v745_v21 }
 0x22f   :  { %v816_v62 = vsel %vm812_vm2, %v811_v22, %v757_v58 }
 0x230   :  { %v821_v45 = vsel %vm817_vm3, %v816_v62, %v769_v52 }
 0x231   :  { %v795_v2 = vpop.permute.xlu1 %794  ;;  %v826_v3 = vsel %vm822_vm4, %v821_v45, %v781_v1 }
 0x232   :  { %v830_v19 = vsel %vm827_vm5, %v825_v49, %v795_v2  ;;  %v831_v6 = vsel %vm827_vm5, %v826_v3, %v797_v63 }
 0x233   :  { %835 = vst.msk [vmem:[#allocation2 + $0x10] sm:$0xff] %vm832_vm6, %v830_v19  ;;  %836 = vst.msk [vmem:[#allocation2 + $0x18] sm:$0xff] %vm832_vm6, %v831_v6 }
 0x234   :  { %930 = shalt.err (!%p927_p4)
}
 0x235   :  { %s931_s28 = scalar_lea.hbm %s1293_s2, 512 }
 0x236   :  { %p932_p5 = scmp.ne.s32.totalorder %s1293_s2, %s931_s28  ;;  %p935_p6 = scmp.lt.u32.totalorder %s931_s28, %s1293_s2 }
 0x238   :  { %p937_p7 = pnand %p935_p6, %p932_p5 }
 0x23a   :  { %940 = shalt.err (!%p937_p7)
}
 0x23b   :  { %s957_s5 = smov 128   ;;  %s958_s6 = smov 8  }
 0x23c   :  { %848 = dma.vmem_to_hbm [thread:$0]  %s843_s24, 512, %s1293_s2, [#allocation3], %s957_s5, %s957_s5, %s958_s6  }
 0x23d   :  { %941 = dma.done.wait [#allocation3], 512  }
 0x23e   :  { %942 = vsyncadd [#allocation3], 4294966784 }
 0x23f   :  { %852 = vsyncpa [#allocation3], 1 }

</bundles_post_ra>
